<compile_context>
chip_gen: v5e
topology: v5e:2x2
jax: 0.10.0
libtpu: 0.0.40
codegen_flags: <defaults>
</compile_context>

<pallas_src>
import functools

import jax
import jax.numpy as jnp
from jax.experimental import pallas as pl
from jax.experimental.pallas import tpu as pltpu


def _vmem_budget_bytes():
    """Usable VMEM budget (generation-aware when possible, safe default)."""
    cap = 64 * 1024 * 1024  # conservative default: v7x physical VMEM per TC
    try:
        cap = int(pltpu.get_tpu_info().vmem_capacity_bytes)
    except Exception:  # interpret mode / older runtimes: keep safe default
        pass
    return (cap * 3) // 4  # headroom for Mosaic internal scratch


def _pick_m_tile(m_total, k_pad, cout_pad, out_bytes, budget_bytes, weight_bytes):
    """Row tile tm: sublane aligned, fits the VMEM budget, targets 256..1024,
    and leaves >= 2 grid steps (megacore) when there is enough work."""
    per_row = 2 * (k_pad * 2) + 2 * (cout_pad * out_bytes)  # dbl-buffered lhs+out
    fixed = 2 * weight_bytes + 4 * cout_pad * 4             # weights + scale/shift
    tm = max(8, (budget_bytes - fixed) // per_row)
    tm = min(tm, 1024, m_total)
    if m_total > 256 and tm > -(-m_total // 2):
        tm = max(256, -(-m_total // 2))                      # keep >= 2 tiles
    return max(8, ((tm + 7) // 8) * 8)


def _conv_kernel(lhs_ref, w_ref, scale_ref, shift_ref, o_ref, *, relu):
    """Fused im2col-matmul + scale/shift (+ ReLU) for one M tile.

    lhs_ref:   (tm, K_pad)        im2col patches (bf16)
    w_ref:     (K_pad, Cout_pad)  folded conv weights (bf16)
    scale_ref: (1, Cout_pad)      folded BN scale (f32)
    shift_ref: (1, Cout_pad)      folded conv-bias + BN shift (f32)
    o_ref:     (tm, Cout_pad)     lane-dense output tile
    """
    y = jnp.dot(lhs_ref[...], w_ref[...], preferred_element_type=jnp.float32)
    y = y * scale_ref[...] + shift_ref[...]
    if relu:
        y = jnp.maximum(y, 0.0)
    o_ref[...] = y.astype(o_ref.dtype)


def conv2d_pallas(x_nchw, weight_oihw, bias, *, stride=1, padding=0,
                  relu=True, bn_scale=None, bn_shift=None,
                  compute_dtype=jnp.bfloat16, store_dtype=None):
    """Conv2d (+ optional BN scale/shift, + optional ReLU) via a Pallas kernel.

    x_nchw:      (N, Cin, H, W)      -- PyTorch layout
    weight_oihw: (Cout, Cin, KH, KW) -- PyTorch layout
    bias:        (Cout,)
    returns:     (N, Cout, OH, OW)
    """
    n, cin, h, w = x_nchw.shape
    cout, _, kh, kw = weight_oihw.shape
    out_dtype = x_nchw.dtype
    # TODO(synk): a downstream consumer could take store_dtype=bf16 and the
    # padded NHWC slab directly (halves writeback, drops the slice+transpose
    # pass); kept f32 / NCHW here to match the PyTorch module exactly.
    store_dtype = out_dtype if store_dtype is None else store_dtype

    # ---- host-side layout glue: NCHW -> NHWC, spatial zero-pad, im2col ----
    x = jnp.transpose(x_nchw, (0, 2, 3, 1))
    if padding:
        x = jnp.pad(x, ((0, 0), (padding, padding), (padding, padding), (0, 0)))
    hp, wp = x.shape[1], x.shape[2]
    oh = (hp - kh) // stride + 1
    ow = (wp - kw) // stride + 1

    # im2col: fold (kh, kw, cin) into the contraction dim K (stride handled
    # here by contiguous strided slices -> no in-kernel subsampling).
    taps = []
    for ikh in range(kh):
        for ikw in range(kw):
            taps.append(x[:, ikh:ikh + (oh - 1) * stride + 1:stride,
                            ikw:ikw + (ow - 1) * stride + 1:stride, :])
    patches = jnp.concatenate(taps, axis=-1)            # (N, OH, OW, KH*KW*Cin)
    k_fold = kh * kw * cin
    m_total = n * oh * ow
    patches = patches.reshape(m_total, k_fold).astype(compute_dtype)

    # lane-dense padding of the contraction and output-channel dims
    k_pad = ((k_fold + 127) // 128) * 128
    lane = 128 if cout <= 128 else 256        # 256 fills the v6e/v7x MXU N
    cout_pad = ((cout + lane - 1) // lane) * lane

    # OIHW -> (KH, KW, Cin, Cout) -> (K_fold, Cout) -> padded bf16 MXU operand
    w_k = jnp.transpose(weight_oihw, (2, 3, 1, 0)).reshape(k_fold, cout)
    w_k = jnp.pad(w_k, ((0, k_pad - k_fold),
                        (0, cout_pad - cout))).astype(compute_dtype)

    # fold conv bias + (eval-mode) BN into a single f32 scale/shift pair
    scale = (jnp.ones((cout,), jnp.float32) if bn_scale is None
             else bn_scale.astype(jnp.float32))
    shift = (jnp.zeros((cout,), jnp.float32) if bn_shift is None
             else bn_shift.astype(jnp.float32))
    eff_scale = jnp.pad(scale, (0, cout_pad - cout)).reshape(1, cout_pad)
    eff_shift = jnp.pad(bias.astype(jnp.float32) * scale + shift,
                        (0, cout_pad - cout)).reshape(1, cout_pad)

    # budget-aware M tiling
    out_bytes = jnp.dtype(store_dtype).itemsize
    budget = _vmem_budget_bytes()
    weight_bytes = k_pad * cout_pad * 2
    tm = _pick_m_tile(m_total, k_pad, cout_pad, out_bytes,
                      (budget * 3) // 4, weight_bytes)
    m_pad = -(-m_total // tm) * tm
    patches = jnp.pad(patches, ((0, m_pad - m_total), (0, k_pad - k_fold)))

    kernel = functools.partial(_conv_kernel, relu=relu)

    # TODO(synk): very large Cin*KH*KW would want a K grid axis (accumulator);
    # a single full-K matmul per tile is kept here since K_pad stays small.
    out2d = pl.pallas_call(
        kernel,
        out_shape=jax.ShapeDtypeStruct((m_pad, cout_pad), store_dtype),
        grid_spec=pltpu.PrefetchScalarGridSpec(
            num_scalar_prefetch=0,
            grid=(m_pad // tm,),
            in_specs=[
                pl.BlockSpec((tm, k_pad), lambda i: (i, 0)),
                # constant-index blocks (fetched once by the pipeliner).
                # TODO(synk): pipeline_mode=pl.Buffered(1) would reclaim their
                # second pipeline buffer on v7x's 64 MiB VMEM.
                pl.BlockSpec((k_pad, cout_pad), lambda i: (0, 0)),
                pl.BlockSpec((1, cout_pad), lambda i: (0, 0)),
                pl.BlockSpec((1, cout_pad), lambda i: (0, 0)),
            ],
            out_specs=pl.BlockSpec((tm, cout_pad), lambda i: (i, 0)),
        ),
        compiler_params=pltpu.CompilerParams(
            dimension_semantics=("parallel",),
            vmem_limit_bytes=int(budget)),
    )(patches, w_k, eff_scale, eff_shift)

    # (M_pad, Cout_pad) -> (N, OH, OW, Cout) -> NCHW
    out_nhwc = out2d[:m_total, :cout].reshape(n, oh, ow, cout)
    return jnp.transpose(out_nhwc, (0, 3, 1, 2)).astype(out_dtype)


class PallasConv2d:
    """Mirror of lib/network.py::Conv2d with deterministic in-script init."""

    def __init__(self, in_channels, out_channels, kernel_size, stride=1,
                 relu=True, same_padding=False, bn=False, *, key):
        self.stride = stride
        self.relu = relu
        self.padding = int((kernel_size - 1) / 2) if same_padding else 0
        self.bn = bn

        kw_key, kb_key = jax.random.split(key)
        fan_in = in_channels * kernel_size * kernel_size
        bound = 1.0 / jnp.sqrt(fan_in)  # PyTorch default conv init bounds
        self.weight = jax.random.uniform(
            kw_key, (out_channels, in_channels, kernel_size, kernel_size),
            jnp.float32, -bound, bound)
        self.bias = jax.random.uniform(
            kb_key, (out_channels,), jnp.float32, -bound, bound)

        if bn:
            # TODO(synk): training-mode BatchNorm (per-batch statistics) has no
            # clean fused equivalent here; eval-mode running stats
            # (mean=0, var=1, gamma=1, beta=0, eps=1e-3) are folded instead.
            eps = 0.001
            gamma = jnp.ones((out_channels,), jnp.float32)
            beta = jnp.zeros((out_channels,), jnp.float32)
            running_mean = jnp.zeros((out_channels,), jnp.float32)
            running_var = jnp.ones((out_channels,), jnp.float32)
            self.bn_scale = gamma / jnp.sqrt(running_var + eps)
            self.bn_shift = beta - running_mean * self.bn_scale
        else:
            self.bn_scale = None
            self.bn_shift = None

    def __call__(self, x_nchw):
        return conv2d_pallas(x_nchw, self.weight, self.bias,
                             stride=self.stride, padding=self.padding,
                             relu=self.relu,
                             bn_scale=self.bn_scale, bn_shift=self.bn_shift)


def _reference(x_nchw, module, op_dtype=jnp.float32):
    """Pure-JAX reference (lax conv) with selectable operand precision."""
    pad = module.padding
    y = jax.lax.conv_general_dilated(
        x_nchw.astype(op_dtype), module.weight.astype(op_dtype),
        window_strides=(module.stride, module.stride),
        padding=[(pad, pad), (pad, pad)],
        dimension_numbers=("NCHW", "OIHW", "NCHW"),
        preferred_element_type=jnp.float32,
        precision=jax.lax.Precision.HIGHEST)
    y = y + module.bias[None, :, None, None]
    if module.bn_scale is not None:
        y = y * module.bn_scale[None, :, None, None] \
              + module.bn_shift[None, :, None, None]
    if module.relu:
        y = jnp.maximum(y, 0.0)
    return y.astype(jnp.float32)


if __name__ == "__main__":
    key = jax.random.PRNGKey(0)
    x_key, p1_key, p2_key = jax.random.split(key, 3)

    # Small shapes consistent with the module: N=2, Cin=4, H=W=16, Cout=8, k=3.
    x = jax.random.normal(x_key, (2, 4, 16, 16), jnp.float32)

    # stride=1, same padding, no BN
    conv1 = PallasConv2d(in_channels=4, out_channels=8, kernel_size=3,
                         stride=1, relu=True, same_padding=True, bn=False,
                         key=p1_key)
    out1 = jax.block_until_ready(conv1(x))
    assert out1.shape == (2, 8, 16, 16)
    ref1_f32 = _reference(x, conv1, jnp.float32)
    assert jnp.allclose(out1, ref1_f32, atol=5e-2, rtol=5e-2)
    ref1_bf16 = _reference(x, conv1, jnp.bfloat16)   # same-precision operands
    assert jnp.allclose(out1, ref1_bf16, atol=5e-3, rtol=5e-3)

    # stride=2 + BN: exercises the strided patch build and the BN fold
    conv2 = PallasConv2d(in_channels=4, out_channels=8, kernel_size=3,
                         stride=2, relu=True, same_padding=True, bn=True,
                         key=p2_key)
    out2 = jax.block_until_ready(conv2(x))
    assert out2.shape == (2, 8, 8, 8)
    ref2_f32 = _reference(x, conv2, jnp.float32)
    assert jnp.allclose(out2, ref2_f32, atol=5e-2, rtol=5e-2)
    ref2_bf16 = _reference(x, conv2, jnp.bfloat16)
    assert jnp.allclose(out2, ref2_bf16, atol=5e-3, rtol=5e-3)

    print("KERNEL_OK")
</pallas_src>

<mosaic_0001>
module attributes {stable_mosaic.version = 11 : i64} {
  func.func @_conv_kernel(%arg0: i32, %arg1: memref<256x128xbf16, #tpu.memory_space<vmem>>, %arg2: memref<128x128xbf16, #tpu.memory_space<vmem>>, %arg3: memref<1x128xf32, #tpu.memory_space<vmem>>, %arg4: memref<1x128xf32, #tpu.memory_space<vmem>>, %arg5: memref<256x128xf32, #tpu.memory_space<vmem>>) attributes {dimension_semantics = [#tpu.dimension_semantics<parallel>], iteration_bounds = array<i64: 2>, scalar_prefetch = 0 : i64, scratch_operands = 0 : i64, tpu.core_type = #tpu.core_type<tc>, window_params = [{transform_indices = @transform_0, window_bounds = array<i64: 256, 128>}, {pipeline_mode = #tpu.pipeline_mode<synchronous>, transform_indices = @transform_1, window_bounds = array<i64: 128, 128>}, {pipeline_mode = #tpu.pipeline_mode<synchronous>, transform_indices = @transform_2, window_bounds = array<i64: 1, 128>}, {pipeline_mode = #tpu.pipeline_mode<synchronous>, transform_indices = @transform_3, window_bounds = array<i64: 1, 128>}, {transform_indices = @transform_4, window_bounds = array<i64: 256, 128>}]} {
    %c0 = arith.constant 0 : index
    %c0_0 = arith.constant 0 : index
    %0 = vector.load %arg1[%c0, %c0_0] : memref<256x128xbf16, #tpu.memory_space<vmem>>, vector<256x128xbf16>
    %c0_1 = arith.constant 0 : index
    %c0_2 = arith.constant 0 : index
    %1 = vector.load %arg2[%c0_1, %c0_2] : memref<128x128xbf16, #tpu.memory_space<vmem>>, vector<128x128xbf16>
    %cst = arith.constant dense<0.000000e+00> : vector<256x128xf32>
    %2 = tpu.matmul %0, %1, %cst {dimension_numbers = #tpu.dot_dimension_numbers<[1], [0], [0], [1], [0, 0, 1, 1], [], []>} : vector<256x128xbf16>, vector<128x128xbf16>, vector<256x128xf32> -> vector<256x128xf32>
    %c0_3 = arith.constant 0 : index
    %c0_4 = arith.constant 0 : index
    %3 = vector.load %arg3[%c0_3, %c0_4] : memref<1x128xf32, #tpu.memory_space<vmem>>, vector<1x128xf32>
    %4 = vector.broadcast %3 : vector<1x128xf32> to vector<256x128xf32>
    %5 = arith.mulf %2, %4 : vector<256x128xf32>
    %c0_5 = arith.constant 0 : index
    %c0_6 = arith.constant 0 : index
    %6 = vector.load %arg4[%c0_5, %c0_6] : memref<1x128xf32, #tpu.memory_space<vmem>>, vector<1x128xf32>
    %7 = vector.broadcast %6 : vector<1x128xf32> to vector<256x128xf32>
    %8 = arith.addf %5, %7 : vector<256x128xf32>
    %cst_7 = arith.constant 0.000000e+00 : f32
    %9 = vector.broadcast %cst_7 : f32 to vector<256x128xf32>
    %10 = arith.maximumf %8, %9 : vector<256x128xf32>
    %c0_8 = arith.constant 0 : index
    %c0_9 = arith.constant 0 : index
    %11 = vector.load %arg5[%c0_8, %c0_9] : memref<256x128xf32, #tpu.memory_space<vmem>>, vector<256x128xf32>
    tpu.vector_store %arg5[%c0_8, %c0_9], %10 {strides = array<i32>} : memref<256x128xf32, #tpu.memory_space<vmem>>, vector<256x128xf32>,
    return
  }
  func.func @transform_0(%arg0: i32) -> (i32, i32) {
    %c0_i32 = arith.constant 0 : i32
    %c0_i32_0 = arith.constant 0 : i32
    return %arg0, %c0_i32 : i32, i32
  }
  func.func @transform_1(%arg0: i32) -> (i32, i32) {
    %c0_i32 = arith.constant 0 : i32
    %c0_i32_0 = arith.constant 0 : i32
    %c0_i32_1 = arith.constant 0 : i32
    return %c0_i32, %c0_i32_0 : i32, i32
  }
  func.func @transform_2(%arg0: i32) -> (i32, i32) {
    %c0_i32 = arith.constant 0 : i32
    %c0_i32_0 = arith.constant 0 : i32
    %c0_i32_1 = arith.constant 0 : i32
    return %c0_i32, %c0_i32_0 : i32, i32
  }
  func.func @transform_3(%arg0: i32) -> (i32, i32) {
    %c0_i32 = arith.constant 0 : i32
    %c0_i32_0 = arith.constant 0 : i32
    %c0_i32_1 = arith.constant 0 : i32
    return %c0_i32, %c0_i32_0 : i32, i32
  }
  func.func @transform_4(%arg0: i32) -> (i32, i32) {
    %c0_i32 = arith.constant 0 : i32
    %c0_i32_0 = arith.constant 0 : i32
    return %arg0, %c0_i32 : i32, i32
  }
}

</mosaic_0001>

<bundles_post_ra>
// kernel: tpu_custom_call.1
= control target key start
LH: loop header
LB: loop body
LE: loop exit
PB: predicated region body
PF: predicated region fallthrough
CT: control target
= control target key end

     0   :  { %9 = vsyncpa [#allocation3], 0  ;;  %s1412_s0 = inlined_call_operand.hbm [shape: bf16[512,128], index: 0, kind: input, shape index: {}]   ;;  %s1413_s1 = inlined_call_operand.hbm [shape: bf16[128,128], index: 1, kind: input, shape index: {}]   ;;  %s1414_s2 = inlined_call_operand.vmem [shape: f32[1,128], index: 2, kind: input, shape index: {}]   ;;  %s1415_s3 = inlined_call_operand.vmem [shape: f32[1,128], index: 3, kind: input, shape index: {}]   ;;  %s1416_s4 = inlined_call_operand.hbm [shape: f32[512,128], index: 4, kind: output, shape index: {}]  }
   0x1   :  { %11 = vsyncpa [#allocation3 + $0x1], 0 }
   0x2   :  { %12 = vsyncpa [#allocation6], 0 }
   0x3   :  { %13 = vsyncpa [#allocation4], 0 }
   0x4   :  { %15 = vsyncpa [#allocation4 + $0x1], 0  ;;  %s1140_s15 = smov 0   ;;  %s1142_s16 = smov 0  }
   0x5   :  { %s1144_s17 = smov 0   ;;  %s1146_s18 = smov 0  }
   0x6 LB: > { %s1161_s19 = sadd.s32 4294967295, %s1108_s18   ;;  %s753_s20 = sadd.s32 4294967294, %s1108_s18   ;;  %s1108_s18 = sphi %s1146_s18, %s1426_s18   ;;  %s1104_s17 = sphi %s1144_s17, %s1425_s17   ;;  %s1100_s16 = sphi %s1142_s16, %s1424_s16   ;;  %s1096_s15 = sphi %s1140_s15, %s1423_s15  }
   0x7   : > { %p41_p0 = scmp.ne.s32.totalorder %s1100_s16, %s1096_s15  ;;  %p42_p1 = scmp.eq.s32.totalorder %s1161_s19, 0 }
   0x8   : > { %p128_p2 = scmp.eq.s32.totalorder %s1161_s19, 1  ;;  %p134_p3 = scmp.eq.s32.totalorder %s753_s20, 1 }
   0x9   : > { %p1170_p4 = por %p42_p1, %p41_p0  ;;  %p754_p5 = scmp.ge.s32.totalorder %s1108_s18, 1 }
   0xa   : > { %p1175_p6 = por %p134_p3, %p41_p0  ;;  %p141_p7 = scmp.lt.s32.totalorder %s1108_s18, 3 }
   0xb   : > { %s152_s25 = sshll.u32 %s1413_s1, 4  ;;  %s1110_s27 = smov [#allocation5]   ;;  %s153_s25 = int_to_ptr.hbm [resolvable:$true] %s152_s25 }
   0xc   : > { %p1183_p8 = pnand %p754_p5, %p141_p7  ;;  %s154_s28 = sshll.u32 %s1110_s27, 4  ;;  %s155_s28 = int_to_ptr.vmem [resolvable:$true] %s154_s28 }
   0xd   : > { %s1193_s29 = sadd.s32 1, %s1108_s18   ;;  %s1111_s30 = smov 64  }
   0xe   : > { %p923_p9 = pneg %p1183_p8  ;;  %s1112_s5 = smov 4  }
   0xf   : > { %s25_s6 = ssub.s32 %s1108_s18, %s1193_s29  ;;  %s28_s7 = sadd.s32 1, %s1104_s17 }
  0x10   : > { %p924_p10 = pnand %p923_p9, %p42_p1  ;;  %p26_p12 = scmp.eq.s32.totalorder %s25_s6, 0 }
  0x11   : > { %p35_p13 = scmp.ne.s32.totalorder %s1104_s17, %s1100_s16  ;;  %p36_p0 = scmp.eq.s32.totalorder %s1108_s18, 0 }
  0x12   : > { %926 = dma.hbm_to_vmem [thread:$0]  (!%p924_p10), %s153_s25, 1024, %s155_s28, [#allocation6], %s1111_s30, %s1111_s30, %s1112_s5  }
  0x13   : > { %s1205_s8 = scalar_select %p26_p12, %s1104_s17, %s28_s7  }
  0x14   : > { %p1209_p3 = por %p128_p2, %p35_p13  ;;  %p936_p5 = scmp.lt.s32.totalorder %s1108_s18, 2 }
  0x15   : > { %s174_s10 = sand.u32 1, %s1104_s17   ;;  %s865_s11 = sshll.u32 %s1108_s18, 7 }
  0x16   : > { %p37_p7 = por %p36_p0, %p35_p13  ;;  %s757_s12 = sshll.u32 %s174_s10, 7 }
  0x17   : > { %s183_s20 = scalar_lea.hbm %s1412_s0, %s865_s11  ;;  %s178_s24 = scalar_lea.vmem [#allocation2], %s757_s12 }
  0x18   : > { %s184_s23 = sshll.u32 %s183_s20, 4  ;;  %s186_s25 = sshll.u32 %s178_s24, 4  ;;  %s185_s23 = int_to_ptr.hbm [resolvable:$true] %s184_s23  ;;  %s187_s25 = int_to_ptr.vmem [resolvable:$true] %s186_s25 }
  0x19   : > { %p1219_p9 = pnand %p936_p5, %p37_p7  ;;  %s175_s28 = scalar_lea.sflag [#allocation3], %s174_s10 }
  0x1a   : > { %s1008_s6 = sshra.s32 %s185_s23, 4  ;;  %s1015_s12 = scalar_lea.hbm %s1412_s0, 256  ;;  %s1009_s6 = int_to_ptr.hbm [resolvable:$true] %s1008_s6 }
  0x1b   : > { %s1010_s7 = scalar_lea.hbm %s1009_s6, 128  ;;  %p1012_p10 = pneg %p1219_p9 }
  0x1c   : > { %p1011_p2 = scmp.ne.s32.totalorder %s1009_s6, %s1010_s7  ;;  %p1016_p0 = scmp.lt.s32.totalorder %s1009_s6, %s1412_s0 }
  0x1d   : > { %p1017_p5 = scmp.lt.s32.totalorder %s1015_s12, %s1010_s7 }
  0x1e   : > { %p1013_p12 = pnand %p1012_p10, %p1011_p2 }
  0x1f   : > { %p1018_p7 = por %p1017_p5, %p1016_p0 }
  0x20   : > { %p1014_p13 = pneg %p1013_p12 }
  0x22   : > { %p1019_p11 = pnand %p1018_p7, %p1014_p13 }
  0x24   : > { %1022 = shalt.err (!%p1019_p11)
}
  0x25   : > { %930 = dma.hbm_to_vmem [thread:$0]  (!%p1219_p9), %s185_s23, 2048, %s187_s25, %s175_s28, %s1111_s30, %s1111_s30, %s1112_s5  }
  0x26   : > { %198 = sbr.rel (%p1183_p8) target bundleno = 278 (0x116), region = 36  ;;  %s1239_s10 = sand.u32 (!%p1183_p8), 1, %s1100_s16  }
  0x27   : > { %s761_s24 = sshll.u32 (!%p1183_p8), %s1239_s10, 7  ;;  %s201_s6 = scalar_lea.sflag (!%p1183_p8), [#allocation3], %s1239_s10 }
  0x28   : > { %s1243_s7 = scalar_lea.vmem (!%p1183_p8), [#allocation2], %s761_s24 }
  0x2b   : > { %1083 = dma.done.wait (%p1170_p4), %s201_s6, 2048  }
  0x2c   : > { %1085 = vsyncadd (%p1170_p4), %s201_s6, 4294965248 }
  0x2d   : > { %1087 = dma.done.wait (%p42_p1), [#allocation6], 1024  }
  0x2e   : > { %1089 = vsyncadd (%p42_p1), [#allocation6], 4294966272  ;;  %v889_v0 = vld [vmem:[#allocation5 + $0x38] sm:$0xff]  ;;  %v888_v1 = vld [vmem:[#allocation5 + $0x30] sm:$0xff]  ;;  %s763_s23 = sshll.u32 %s1239_s10, 8  ;;  %s890_s27 = sshll.u32 %s1161_s19, 8 }
  0x2f   : > { %429 = vmatpush.bf16.msra.mxu0 %v889_v0  ;;  %891 = vmatpush.bf16.msra.mxu1 %v889_v0  ;;  %v887_v2 = vld [vmem:[#allocation5 + $0x28] sm:$0xff]  ;;  %v886_v3 = vld [vmem:[#allocation5 + $0x20] sm:$0xff]  ;;  %v885_v4 = vld [vmem:[#allocation5 + $0x18] sm:$0xff]  ;;  %s1284_s25 = scalar_lea.vmem [#allocation7], %s763_s23  ;;  %s666_s13 = scalar_lea.hbm %s1416_s4, %s890_s27 }
  0x30   : > { %892 = vmatpush.bf16.msra.mxu2 %v889_v0  ;;  %893 = vmatpush.bf16.msra.mxu3 %v889_v0  ;;  %v884_v5 = vld [vmem:[#allocation5 + $0x10] sm:$0xff]  ;;  %v883_v6 = vld [vmem:[#allocation5 + $0x8] sm:$0xff]  ;;  %v882_v7 = vld [vmem:[#allocation5] sm:$0xff]  ;;  %s667_s19 = sshll.u32 %s1284_s25, 4  ;;  %s669_s12 = sshll.u32 %s666_s13, 4  ;;  %s668_s19 = int_to_ptr.vmem [resolvable:$true] %s667_s19  ;;  %s670_s12 = int_to_ptr.hbm [resolvable:$true] %s669_s12 }
  0x31   : > { %v866_v8 = vld [vmem:[%s1243_s7] sm:$0xff]  ;;  %v867_v12 = vld [vmem:[%s1243_s7 + $0x8] sm:$0xff]  ;;  %v868_v16 = vld [vmem:[%s1243_s7 + $0x10] sm:$0xff]  ;;  %s655_s14 = scalar_lea.sflag [#allocation4], %s1239_s10  ;;  %s1052_s20 = sshra.s32 %s670_s12, 4  ;;  %s1053_s20 = int_to_ptr.hbm [resolvable:$true] %s1052_s20 }
  0x32   : > { %v870_v9 = vld [vmem:[%s1243_s7 + $0x20] sm:$0xff]  ;;  %v871_v13 = vld [vmem:[%s1243_s7 + $0x28] sm:$0xff]  ;;  %v872_v17 = vld [vmem:[%s1243_s7 + $0x30] sm:$0xff]  ;;  %s1054_s24 = scalar_lea.hbm %s1053_s20, 256  ;;  %s1058_s21 = scalar_lea.hbm %s1416_s4, 512 }
  0x33   : > { %430 = vmatpush.bf16.msra.mxu0 %v888_v1  ;;  %894 = vmatpush.bf16.msra.mxu1 %v888_v1  ;;  %v874_v10 = vld [vmem:[%s1243_s7 + $0x40] sm:$0xff]  ;;  %v875_v14 = vld [vmem:[%s1243_s7 + $0x48] sm:$0xff]  ;;  %v876_v18 = vld [vmem:[%s1243_s7 + $0x50] sm:$0xff]  ;;  %p1055_p1 = scmp.ne.s32.totalorder %s1053_s20, %s1054_s24  ;;  %p1059_p11 = scmp.lt.s32.totalorder %s1053_s20, %s1416_s4 }
  0x34   : > { %895 = vmatpush.bf16.msra.mxu2 %v888_v1  ;;  %896 = vmatpush.bf16.msra.mxu3 %v888_v1  ;;  %v878_v11 = vld [vmem:[%s1243_s7 + $0x60] sm:$0xff]  ;;  %v879_v15 = vld [vmem:[%s1243_s7 + $0x68] sm:$0xff]  ;;  %v880_v19 = vld [vmem:[%s1243_s7 + $0x70] sm:$0xff]  ;;  %p1060_p9 = scmp.lt.s32.totalorder %s1058_s21, %s1054_s24 }
  0x35   : > { %v869_v20 = vld [vmem:[%s1243_s7 + $0x18] sm:$0xff]  ;;  %v1272_v24 = vld [vmem:[%s1414_s2] ss:$0 sm:$0xff]  ;;  %p1056_p4 = pnand %p1055_p1, %p1209_p3 }
  0x36   : > { %v873_v21 = vld [vmem:[%s1243_s7 + $0x38] sm:$0xff]  ;;  %v1277_v25 = vld [vmem:[%s1415_s3] ss:$0 sm:$0xff]  ;;  %p1061_p2 = por %p1060_p9, %p1059_p11 }
  0x37   : > { %431 = vmatpush.bf16.msra.mxu0 %v887_v2  ;;  %897 = vmatpush.bf16.msra.mxu1 %v887_v2  ;;  %v877_v22 = vld [vmem:[%s1243_s7 + $0x58] sm:$0xff]  ;;  %p1057_p8 = pneg %p1056_p4 }
  0x38   : > { %898 = vmatpush.bf16.msra.mxu2 %v887_v2  ;;  %899 = vmatpush.bf16.msra.mxu3 %v887_v2  ;;  %v881_v23 = vld [vmem:[%s1243_s7 + $0x78] sm:$0xff] }
  0x39   : > { %p1062_p10 = pnand %p1061_p2, %p1057_p8 }
  0x3b   : > { %432 = vmatpush.bf16.msra.mxu0 %v886_v3  ;;  %900 = vmatpush.bf16.msra.mxu1 %v886_v3 }
  0x3c   : > { %901 = vmatpush.bf16.msra.mxu2 %v886_v3  ;;  %902 = vmatpush.bf16.msra.mxu3 %v886_v3 }
  0x3f   : > { %433 = vmatpush.bf16.msra.mxu0 %v885_v4  ;;  %903 = vmatpush.bf16.msra.mxu1 %v885_v4 }
  0x40   : > { %904 = vmatpush.bf16.msra.mxu2 %v885_v4  ;;  %905 = vmatpush.bf16.msra.mxu3 %v885_v4 }
  0x43   : > { %434 = vmatpush.bf16.msra.mxu0 %v884_v5  ;;  %906 = vmatpush.bf16.msra.mxu1 %v884_v5 }
  0x44   : > { %907 = vmatpush.bf16.msra.mxu2 %v884_v5  ;;  %908 = vmatpush.bf16.msra.mxu3 %v884_v5 }
  0x47   : > { %435 = vmatpush.bf16.msra.mxu0 %v883_v6  ;;  %909 = vmatpush.bf16.msra.mxu1 %v883_v6 }
  0x48   : > { %910 = vmatpush.bf16.msra.mxu2 %v883_v6  ;;  %911 = vmatpush.bf16.msra.mxu3 %v883_v6 }
  0x4b   : > { %436 = vmatpush.bf16.msra.mxu0 %v882_v7  ;;  %912 = vmatpush.bf16.msra.mxu1 %v882_v7 }
  0x4c   : > { %913 = vmatpush.bf16.msra.mxu2 %v882_v7  ;;  %914 = vmatpush.bf16.msra.mxu3 %v882_v7 }
  0x4e   : > { %437 = vmatmul.bf16.vlgmr.msra.gmra.mxu0 %v866_v8  ;;  %457 = vmatmul.bf16.vlgmr.msra.gmra.mxu1 %v870_v9 }
  0x4f   : > { %477 = vmatmul.bf16.vlgmr.msra.gmra.mxu2 %v874_v10  ;;  %497 = vmatmul.bf16.vlgmr.msra.gmra.mxu3 %v878_v11 }
  0x5e   : > { %442 = vmatmul.bf16.gmra.mxu0 %v867_v12  ;;  %462 = vmatmul.bf16.gmra.mxu1 %v871_v13 }
  0x5f   : > { %482 = vmatmul.bf16.gmra.mxu2 %v875_v14  ;;  %502 = vmatmul.bf16.gmra.mxu3 %v879_v15 }
  0x6e   : > { %447 = vmatmul.bf16.gmra.mxu0 %v868_v16  ;;  %467 = vmatmul.bf16.gmra.mxu1 %v872_v17 }
  0x6f   : > { %487 = vmatmul.bf16.gmra.mxu2 %v876_v18  ;;  %507 = vmatmul.bf16.gmra.mxu3 %v880_v19 }
  0x7e   : > { %452 = vmatmul.bf16.gmra.mxu0 %v869_v20  ;;  %472 = vmatmul.bf16.gmra.mxu1 %v873_v21 }
  0x7f   : > { %492 = vmatmul.bf16.gmra.mxu2 %v877_v22  ;;  %512 = vmatmul.bf16.gmra.mxu3 %v881_v23 }
  0xcb   : > { %v438_v26 = vpop.f32.mrf.mxu0  ;;  %v458_v27 = vpop.f32.mrf.mxu1 }
  0xcc   : > { %v522_v28 = vmul.f32 %v1272_v24, %v438_v26  ;;  %v530_v29 = vmul.f32 %v1272_v24, %v458_v27 }
  0xce   : > { %v558_v30 = vadd.f32 %v1277_v25, %v522_v28  ;;  %v566_v31 = vadd.f32 %v1277_v25, %v530_v29 }
  0xd0   : > { %v590_v32 = vmax.f32 %v558_v30, 0.0  ;;  %v598_v33 = vmax.f32 %v566_v31, 0.0 }
  0xd2   : > { %622 = vst [vmem:[%s1284_s25] sm:$0xff] %v590_v32  ;;  %v478_v34 = vpop.f32.mrf.mxu2  ;;  %v498_v35 = vpop.f32.mrf.mxu3 }
  0xd3   : > { %630 = vst [vmem:[%s1284_s25 + $0x40] sm:$0xff] %v598_v33  ;;  %v538_v36 = vmul.f32 %v1272_v24, %v478_v34  ;;  %v546_v37 = vmul.f32 %v1272_v24, %v498_v35  ;;  %v440_v38 = vpop.f32.mrf.mxu0  ;;  %v460_v39 = vpop.f32.mrf.mxu1 }
  0xd4   : > { %v523_v40 = vmul.f32 %v1272_v24, %v440_v38  ;;  %v531_v41 = vmul.f32 %v1272_v24, %v460_v39 }
  0xd5   : > { %v574_v42 = vadd.f32 %v1277_v25, %v538_v36  ;;  %v582_v43 = vadd.f32 %v1277_v25, %v546_v37 }
  0xd6   : > { %v559_v44 = vadd.f32 %v1277_v25, %v523_v40  ;;  %v567_v45 = vadd.f32 %v1277_v25, %v531_v41 }
  0xd7   : > { %v606_v46 = vmax.f32 %v574_v42, 0.0  ;;  %v614_v47 = vmax.f32 %v582_v43, 0.0 }
  0xd8   : > { %v591_v48 = vmax.f32 %v559_v44, 0.0  ;;  %v599_v49 = vmax.f32 %v567_v45, 0.0 }
  0xd9   : > { %638 = vst [vmem:[%s1284_s25 + $0x80] sm:$0xff] %v606_v46 }
  0xda   : > { %646 = vst [vmem:[%s1284_s25 + $0xc0] sm:$0xff] %v614_v47  ;;  %v480_v50 = vpop.f32.mrf.mxu2  ;;  %v500_v51 = vpop.f32.mrf.mxu3 }
  0xdb   : > { %623 = vst [vmem:[%s1284_s25 + $0x8] sm:$0xff] %v591_v48  ;;  %v539_v52 = vmul.f32 %v1272_v24, %v480_v50  ;;  %v547_v53 = vmul.f32 %v1272_v24, %v500_v51  ;;  %v443_v54 = vpop.f32.mrf.mxu0  ;;  %v463_v55 = vpop.f32.mrf.mxu1 }
  0xdc   : > { %631 = vst [vmem:[%s1284_s25 + $0x48] sm:$0xff] %v599_v49  ;;  %v524_v56 = vmul.f32 %v1272_v24, %v443_v54  ;;  %v532_v57 = vmul.f32 %v1272_v24, %v463_v55 }
  0xdd   : > { %v575_v58 = vadd.f32 %v1277_v25, %v539_v52  ;;  %v583_v59 = vadd.f32 %v1277_v25, %v547_v53 }
  0xde   : > { %v560_v60 = vadd.f32 %v1277_v25, %v524_v56  ;;  %v568_v61 = vadd.f32 %v1277_v25, %v532_v57 }
  0xdf   : > { %v607_v62 = vmax.f32 %v575_v58, 0.0  ;;  %v615_v63 = vmax.f32 %v583_v59, 0.0 }
  0xe0   : > { %v592_v0 = vmax.f32 %v560_v60, 0.0  ;;  %v600_v1 = vmax.f32 %v568_v61, 0.0 }
  0xe1   : > { %639 = vst [vmem:[%s1284_s25 + $0x88] sm:$0xff] %v607_v62 }
  0xe2   : > { %647 = vst [vmem:[%s1284_s25 + $0xc8] sm:$0xff] %v615_v63  ;;  %v483_v2 = vpop.f32.mrf.mxu2  ;;  %v503_v3 = vpop.f32.mrf.mxu3 }
  0xe3   : > { %624 = vst [vmem:[%s1284_s25 + $0x10] sm:$0xff] %v592_v0  ;;  %v540_v4 = vmul.f32 %v1272_v24, %v483_v2  ;;  %v548_v5 = vmul.f32 %v1272_v24, %v503_v3  ;;  %v445_v6 = vpop.f32.mrf.mxu0  ;;  %v465_v7 = vpop.f32.mrf.mxu1 }
  0xe4   : > { %632 = vst [vmem:[%s1284_s25 + $0x50] sm:$0xff] %v600_v1  ;;  %v525_v8 = vmul.f32 %v1272_v24, %v445_v6  ;;  %v533_v9 = vmul.f32 %v1272_v24, %v465_v7 }
  0xe5   : > { %v576_v10 = vadd.f32 %v1277_v25, %v540_v4  ;;  %v584_v11 = vadd.f32 %v1277_v25, %v548_v5 }
  0xe6   : > { %v561_v12 = vadd.f32 %v1277_v25, %v525_v8  ;;  %v569_v13 = vadd.f32 %v1277_v25, %v533_v9 }
  0xe7   : > { %v608_v14 = vmax.f32 %v576_v10, 0.0  ;;  %v616_v15 = vmax.f32 %v584_v11, 0.0 }
  0xe8   : > { %v593_v16 = vmax.f32 %v561_v12, 0.0  ;;  %v601_v17 = vmax.f32 %v569_v13, 0.0 }
  0xe9   : > { %640 = vst [vmem:[%s1284_s25 + $0x90] sm:$0xff] %v608_v14 }
  0xea   : > { %648 = vst [vmem:[%s1284_s25 + $0xd0] sm:$0xff] %v616_v15  ;;  %v485_v18 = vpop.f32.mrf.mxu2  ;;  %v505_v19 = vpop.f32.mrf.mxu3 }
  0xeb   : > { %625 = vst [vmem:[%s1284_s25 + $0x18] sm:$0xff] %v593_v16  ;;  %v541_v20 = vmul.f32 %v1272_v24, %v485_v18  ;;  %v549_v21 = vmul.f32 %v1272_v24, %v505_v19  ;;  %v448_v22 = vpop.f32.mrf.mxu0  ;;  %v468_v23 = vpop.f32.mrf.mxu1 }
  0xec   : > { %633 = vst [vmem:[%s1284_s25 + $0x58] sm:$0xff] %v601_v17  ;;  %v526_v26 = vmul.f32 %v1272_v24, %v448_v22  ;;  %v534_v27 = vmul.f32 %v1272_v24, %v468_v23 }
  0xed   : > { %v577_v28 = vadd.f32 %v1277_v25, %v541_v20  ;;  %v585_v29 = vadd.f32 %v1277_v25, %v549_v21 }
  0xee   : > { %v562_v30 = vadd.f32 %v1277_v25, %v526_v26  ;;  %v570_v31 = vadd.f32 %v1277_v25, %v534_v27 }
  0xef   : > { %v609_v32 = vmax.f32 %v577_v28, 0.0  ;;  %v617_v33 = vmax.f32 %v585_v29, 0.0 }
  0xf0   : > { %v594_v34 = vmax.f32 %v562_v30, 0.0  ;;  %v602_v35 = vmax.f32 %v570_v31, 0.0 }
  0xf1   : > { %641 = vst [vmem:[%s1284_s25 + $0x98] sm:$0xff] %v609_v32 }
  0xf2   : > { %649 = vst [vmem:[%s1284_s25 + $0xd8] sm:$0xff] %v617_v33  ;;  %v488_v36 = vpop.f32.mrf.mxu2  ;;  %v508_v37 = vpop.f32.mrf.mxu3 }
  0xf3   : > { %626 = vst [vmem:[%s1284_s25 + $0x20] sm:$0xff] %v594_v34  ;;  %v542_v38 = vmul.f32 %v1272_v24, %v488_v36  ;;  %v550_v39 = vmul.f32 %v1272_v24, %v508_v37  ;;  %v450_v40 = vpop.f32.mrf.mxu0  ;;  %v470_v41 = vpop.f32.mrf.mxu1 }
  0xf4   : > { %634 = vst [vmem:[%s1284_s25 + $0x60] sm:$0xff] %v602_v35  ;;  %v527_v42 = vmul.f32 %v1272_v24, %v450_v40  ;;  %v535_v43 = vmul.f32 %v1272_v24, %v470_v41 }
  0xf5   : > { %v578_v44 = vadd.f32 %v1277_v25, %v542_v38  ;;  %v586_v45 = vadd.f32 %v1277_v25, %v550_v39 }
  0xf6   : > { %v563_v46 = vadd.f32 %v1277_v25, %v527_v42  ;;  %v571_v47 = vadd.f32 %v1277_v25, %v535_v43 }
  0xf7   : > { %v610_v48 = vmax.f32 %v578_v44, 0.0  ;;  %v618_v49 = vmax.f32 %v586_v45, 0.0 }
  0xf8   : > { %v595_v50 = vmax.f32 %v563_v46, 0.0  ;;  %v603_v51 = vmax.f32 %v571_v47, 0.0 }
  0xf9   : > { %642 = vst [vmem:[%s1284_s25 + $0xa0] sm:$0xff] %v610_v48 }
  0xfa   : > { %650 = vst [vmem:[%s1284_s25 + $0xe0] sm:$0xff] %v618_v49  ;;  %v490_v52 = vpop.f32.mrf.mxu2  ;;  %v510_v53 = vpop.f32.mrf.mxu3 }
  0xfb   : > { %627 = vst [vmem:[%s1284_s25 + $0x28] sm:$0xff] %v595_v50  ;;  %v543_v54 = vmul.f32 %v1272_v24, %v490_v52  ;;  %v551_v55 = vmul.f32 %v1272_v24, %v510_v53  ;;  %v453_v56 = vpop.f32.mrf.mxu0  ;;  %v473_v57 = vpop.f32.mrf.mxu1 }
  0xfc   : > { %635 = vst [vmem:[%s1284_s25 + $0x68] sm:$0xff] %v603_v51  ;;  %v528_v58 = vmul.f32 %v1272_v24, %v453_v56  ;;  %v536_v59 = vmul.f32 %v1272_v24, %v473_v57 }
  0xfd   : > { %v579_v60 = vadd.f32 %v1277_v25, %v543_v54  ;;  %v587_v61 = vadd.f32 %v1277_v25, %v551_v55 }
  0xfe   : > { %v564_v62 = vadd.f32 %v1277_v25, %v528_v58  ;;  %v572_v63 = vadd.f32 %v1277_v25, %v536_v59 }
  0xff   : > { %v611_v0 = vmax.f32 %v579_v60, 0.0  ;;  %v619_v1 = vmax.f32 %v587_v61, 0.0 }
 0x100   : > { %v596_v2 = vmax.f32 %v564_v62, 0.0  ;;  %v604_v3 = vmax.f32 %v572_v63, 0.0 }
 0x101   : > { %643 = vst [vmem:[%s1284_s25 + $0xa8] sm:$0xff] %v611_v0 }
 0x102   : > { %651 = vst [vmem:[%s1284_s25 + $0xe8] sm:$0xff] %v619_v1  ;;  %v493_v4 = vpop.f32.mrf.mxu2  ;;  %v513_v5 = vpop.f32.mrf.mxu3 }
 0x103   : > { %628 = vst [vmem:[%s1284_s25 + $0x30] sm:$0xff] %v596_v2  ;;  %v544_v6 = vmul.f32 %v1272_v24, %v493_v4  ;;  %v552_v7 = vmul.f32 %v1272_v24, %v513_v5  ;;  %v455_v8 = vpop.f32.mrf.mxu0  ;;  %v475_v9 = vpop.f32.mrf.mxu1 }
 0x104   : > { %636 = vst [vmem:[%s1284_s25 + $0x70] sm:$0xff] %v604_v3  ;;  %v529_v10 = vmul.f32 %v1272_v24, %v455_v8  ;;  %v537_v11 = vmul.f32 %v1272_v24, %v475_v9 }
 0x105   : > { %v580_v12 = vadd.f32 %v1277_v25, %v544_v6  ;;  %v588_v13 = vadd.f32 %v1277_v25, %v552_v7 }
 0x106   : > { %v565_v14 = vadd.f32 %v1277_v25, %v529_v10  ;;  %v573_v15 = vadd.f32 %v1277_v25, %v537_v11 }
 0x107   : > { %v612_v16 = vmax.f32 %v580_v12, 0.0  ;;  %v620_v17 = vmax.f32 %v588_v13, 0.0 }
 0x108   : > { %v597_v18 = vmax.f32 %v565_v14, 0.0  ;;  %v605_v19 = vmax.f32 %v573_v15, 0.0 }
 0x109   : > { %644 = vst [vmem:[%s1284_s25 + $0xb0] sm:$0xff] %v612_v16 }
 0x10a   : > { %652 = vst [vmem:[%s1284_s25 + $0xf0] sm:$0xff] %v620_v17  ;;  %v495_v20 = vpop.f32.mrf.mxu2  ;;  %v515_v21 = vpop.f32.mrf.mxu3 }
 0x10b   : > { %629 = vst [vmem:[%s1284_s25 + $0x38] sm:$0xff] %v597_v18  ;;  %v545_v22 = vmul.f32 %v1272_v24, %v495_v20  ;;  %v553_v23 = vmul.f32 %v1272_v24, %v515_v21 }
 0x10c   : > { %637 = vst [vmem:[%s1284_s25 + $0x78] sm:$0xff] %v605_v19 }
 0x10d   : > { %v581_v26 = vadd.f32 %v1277_v25, %v545_v22  ;;  %v589_v27 = vadd.f32 %v1277_v25, %v553_v23 }
 0x10f   : > { %v613_v28 = vmax.f32 %v581_v26, 0.0  ;;  %v621_v29 = vmax.f32 %v589_v27, 0.0 }
 0x111   : > { %645 = vst [vmem:[%s1284_s25 + $0xb8] sm:$0xff] %v613_v28 }
 0x112   : > { %653 = vst [vmem:[%s1284_s25 + $0xf8] sm:$0xff] %v621_v29 }
 0x113   : > { %1065 = shalt.err (!%p1062_p10)
}
 0x114   : > { %s1113_s10 = smov 128   ;;  %s1114_s5 = smov 8  }
 0x115   : > { %921 = dma.vmem_to_hbm [thread:$0]  (%p1209_p3), %s668_s19, 4096, %s670_s12, %s655_s14, %s1113_s10, %s1113_s10, %s1114_s5  }
 0x116 PF: > { %s684_s23 = sand.u32 1, %s1096_s15   ;;  %p1422_p12 = scmp.ge.s32.totalorder %s1108_s18, 2 }
 0x117   : > { %s685_s25 = scalar_lea.sflag [#allocation4], %s684_s23 }
 0x118   : > { %p932_p13 = pnand %p1422_p12, %p1175_p6 }
 0x11a   : > { %p933_p0 = pneg %p932_p13 }
 0x11c   : > { %1091 = dma.done.wait (%p933_p0), %s685_s25, 4096  }
 0x11d   : > { %1093 = vsyncadd (%p933_p0), %s685_s25, 4294963200  ;;  %p18_p5 = scmp.ge.s32.totalorder %s1193_s29, 4   ;;  %s1423_s15 = smov %s1100_s16 }
 0x11e   : > { %s1424_s16 = smov %s1104_s17  ;;  %s1425_s17 = smov %s1205_s8 }
 0x11f   : > { %s1426_s18 = smov %s1193_s29  ;;  %20 = sbr.rel (!%p18_p5) target bundleno = 6 (0x6), region = 85 }
 0x124   :  { %691 = vsyncpa [#allocation3], 1 }
 0x125   :  { %693 = vsyncpa [#allocation3 + $0x1], 1 }
 0x126   :  { %694 = vsyncpa [#allocation6], 1 }
 0x127   :  { %695 = vsyncpa [#allocation4], 1 }
 0x128   :  { %697 = vsyncpa [#allocation4 + $0x1], 1 }

</bundles_post_ra>
